<compile_context>
chip_gen: v7x
topology: tpu7x:2x2x1
jax: 0.10.0
libtpu: 0.0.40
codegen_flags: <defaults>
</compile_context>

<pallas_src>
import functools
import math

import jax
import jax.numpy as jnp
from jax.experimental import pallas as pl
from jax.experimental.pallas import tpu as pltpu


# ----------------------------------------------------------------------------
# Tiling policy
# ----------------------------------------------------------------------------
_TM_MAX = 512            # rows per block (sublane axis), multiple of 16 (bf16 pack)
_TN_MAX = 256            # output cols per block (lane axis), multiple of 128
_TK_MAX = 2048           # reduction cols per block (>=2 MiB weight DMA per step)
_FULL_K_CAP = 4096       # keep K resident if padded K <= this
_VMEM_LIMIT = 48 * 1024 * 1024   # <= ~48 MiB: safe on v7x (64 MiB phys), ample elsewhere


def _round_up(x, m):
    return ((x + m - 1) // m) * m


def _m_tiling(m, want_two_blocks=False):
    """Row tiling.  want_two_blocks: split M so >=2 'parallel' blocks exist
    (keeps both v7x TensorCores busy when the N grid collapses to one block)."""
    mp16 = _round_up(m, 16)
    tm = min(mp16, _TM_MAX)
    if want_two_blocks and mp16 >= 32:
        tm = min(tm, _round_up((mp16 + 1) // 2, 16))
    return tm, _round_up(m, tm)


def _n_tiling(n):
    np_ = _round_up(n, 128)
    if np_ <= _TN_MAX:
        return np_, np_
    return _TN_MAX, _round_up(n, _TN_MAX)


def _k_tiling(k):
    kp = _round_up(k, 128)
    if kp <= _FULL_K_CAP:
        return kp, kp
    return _TK_MAX, _round_up(k, _TK_MAX)


def _pad2d(a, rows, cols):
    r, c = a.shape
    if (r, c) == (rows, cols):
        return a
    return jnp.pad(a, ((0, rows - r), (0, cols - c)))


# ----------------------------------------------------------------------------
# Kernel 1: tiled  y = relu?(x @ w_t + b)   (bf16 MXU operands, f32 accumulate)
# ----------------------------------------------------------------------------
def _matmul_bias_act_kernel(x_ref, w_ref, b_ref, o_ref, acc_ref, *, apply_relu):
    @pl.when(pl.program_id(2) == 0)
    def _():
        acc_ref[...] = jnp.zeros_like(acc_ref)

    acc_ref[...] += jnp.dot(x_ref[...], w_ref[...],
                            preferred_element_type=jnp.float32)

    @pl.when(pl.program_id(2) == pl.num_programs(2) - 1)
    def _():
        y = acc_ref[...] + b_ref[...]          # (1, tn) bias broadcasts over rows
        if apply_relu:                         # trace-time constant
            y = jnp.maximum(y, 0.0)
        o_ref[...] = y.astype(o_ref.dtype)


def pallas_linear(x, w_t, b, *, n_out=None, apply_relu=False,
                  out_dtype=jnp.bfloat16):
    """x: (M, K); w_t: (Kw, Nw) pre-padded bf16; b: (1, Nw) f32.
    Returns (M, n_out) in out_dtype (bf16 for intermediate layers)."""
    M, K = x.shape
    Kw, Nw = w_t.shape
    assert Kw >= K, "weight reduction dim smaller than input"
    assert w_t.dtype == jnp.bfloat16
    if n_out is None:
        n_out = Nw

    tn, Np = _n_tiling(Nw)
    tk, Kp = _k_tiling(Kw)
    tm, Mp = _m_tiling(M, want_two_blocks=(Np // tn == 1))

    if x.dtype != jnp.bfloat16:
        x = x.astype(jnp.bfloat16)
    x = _pad2d(x, Mp, Kp)
    w_t = _pad2d(w_t, Kp, Np)
    b = _pad2d(b.astype(jnp.float32), 1, Np)

    grid = (Mp // tm, Np // tn, Kp // tk)
    kernel = functools.partial(_matmul_bias_act_kernel, apply_relu=apply_relu)
    out_bytes = jnp.dtype(out_dtype).itemsize

    cost = pl.CostEstimate(
        flops=2 * Mp * Np * Kp,
        transcendentals=0,
        bytes_accessed=(Mp * Kp + Kp * Np) * 2 + Mp * Np * out_bytes + Np * 4,
    )

    out = pl.pallas_call(
        kernel,
        out_shape=jax.ShapeDtypeStruct((Mp, Np), out_dtype),
        grid_spec=pltpu.PrefetchScalarGridSpec(
            num_scalar_prefetch=0,
            grid=grid,
            in_specs=[
                pl.BlockSpec((tm, tk), lambda i, j, k: (i, k)),
                pl.BlockSpec((tk, tn), lambda i, j, k: (k, j)),
                pl.BlockSpec((1, tn), lambda i, j, k: (0, j)),
            ],
            out_specs=pl.BlockSpec((tm, tn), lambda i, j, k: (i, j)),
            scratch_shapes=[pltpu.VMEM((tm, tn), jnp.float32)],
        ),
        compiler_params=pltpu.CompilerParams(
            dimension_semantics=("parallel", "parallel", "arbitrary"),
            vmem_limit_bytes=_VMEM_LIMIT,
        ),
        cost_estimate=cost,
    )(x, w_t, b)

    return out[:M, :n_out]


# ----------------------------------------------------------------------------
# Kernel 2: fused FC head  q = relu(x @ W1 + b1) @ W2 + b2  (one pallas_call)
# ----------------------------------------------------------------------------
def _fc_head_kernel(x_ref, w1_ref, b1_ref, w2_ref, b2_ref, o_ref, acc_ref):
    @pl.when(pl.program_id(1) == 0)
    def _():
        acc_ref[...] = jnp.zeros_like(acc_ref)

    acc_ref[...] += jnp.dot(x_ref[...], w1_ref[...],
                            preferred_element_type=jnp.float32)

    @pl.when(pl.program_id(1) == pl.num_programs(1) - 1)
    def _():
        h = jnp.maximum(acc_ref[...] + b1_ref[...], 0.0).astype(jnp.bfloat16)
        y = jnp.dot(h, w2_ref[...], preferred_element_type=jnp.float32) + b2_ref[...]
        o_ref[...] = y.astype(o_ref.dtype)


def pallas_fc_head(x, w1_t, b1, w2_t, b2, *, n_out):
    """x: (M, K) bf16; w1_t: (Kp, H) bf16; b1: (1, H) f32;
    w2_t: (H, N2p) bf16; b2: (1, N2p) f32.  Returns (M, n_out) f32."""
    M, K = x.shape
    K1, H = w1_t.shape
    H2, N2 = w2_t.shape
    assert H == H2 and K1 >= K
    assert w1_t.dtype == jnp.bfloat16 and w2_t.dtype == jnp.bfloat16

    tk, Kp = _k_tiling(K1)
    tm, Mp = _m_tiling(M, want_two_blocks=True)

    if x.dtype != jnp.bfloat16:
        x = x.astype(jnp.bfloat16)
    x = _pad2d(x, Mp, Kp)
    w1_t = _pad2d(w1_t, Kp, H)

    grid = (Mp // tm, Kp // tk)

    cost = pl.CostEstimate(
        flops=2 * Mp * Kp * H + 2 * Mp * H * N2,
        transcendentals=0,
        bytes_accessed=(Mp * Kp + Kp * H + H * N2) * 2 + Mp * N2 * 4 + (H + N2) * 4,
    )

    out = pl.pallas_call(
        _fc_head_kernel,
        out_shape=jax.ShapeDtypeStruct((Mp, N2), jnp.float32),
        grid_spec=pltpu.PrefetchScalarGridSpec(
            num_scalar_prefetch=0,
            grid=grid,
            in_specs=[
                pl.BlockSpec((tm, tk), lambda i, k: (i, k)),
                pl.BlockSpec((tk, H), lambda i, k: (k, 0)),
                pl.BlockSpec((1, H), lambda i, k: (0, 0)),
                pl.BlockSpec((H, N2), lambda i, k: (0, 0)),
                pl.BlockSpec((1, N2), lambda i, k: (0, 0)),
            ],
            out_specs=pl.BlockSpec((tm, N2), lambda i, k: (i, 0)),
            scratch_shapes=[pltpu.VMEM((tm, H), jnp.float32)],
        ),
        compiler_params=pltpu.CompilerParams(
            dimension_semantics=("parallel", "arbitrary"),
            vmem_limit_bytes=_VMEM_LIMIT,
        ),
        cost_estimate=cost,
    )(x, w1_t, b1, w2_t, b2)

    return out[:M, :n_out]


# ----------------------------------------------------------------------------
# Conv2d (valid padding, square kernel, stride) via NHWC im2col + Pallas matmul
# ----------------------------------------------------------------------------
def _im2col_nhwc(x, ksize, stride):
    """x: (N, H, W, C) bf16 -> (N*Ho*Wo, K*K*C), column order = (ki, kj, c)."""
    n, h, w, c = x.shape
    ho = (h - ksize) // stride + 1
    wo = (w - ksize) // stride + 1
    cols = []
    for ki in range(ksize):
        for kj in range(ksize):
            cols.append(
                x[:, ki:ki + stride * ho:stride, kj:kj + stride * wo:stride, :]
            )  # (N, Ho, Wo, C)
    patches = jnp.concatenate(cols, axis=-1)          # (N, Ho, Wo, K*K*C)
    return patches.reshape(n * ho * wo, ksize * ksize * c), ho, wo


def conv2d_relu_nhwc(x, w_t_pad, b_pad, cout, ksize, stride):
    """x: (N, H, W, Cin) bf16 -> (N, Ho, Wo, Cout) bf16, fused conv+bias+ReLU."""
    n = x.shape[0]
    patches, ho, wo = _im2col_nhwc(x, ksize, stride)
    y = pallas_linear(patches, w_t_pad, b_pad, n_out=cout, apply_relu=True,
                      out_dtype=jnp.bfloat16)
    return y.reshape(n, ho, wo, cout)


# ----------------------------------------------------------------------------
# Parameter init / pre-packing (PyTorch-like fan_in uniform ranges)
# ----------------------------------------------------------------------------
def _uniform(key, shape, bound):
    return jax.random.uniform(key, shape, jnp.float32, -bound, bound)


def _prep_conv_weight(w, b):
    """w: (Cout, Cin, K, K), b: (Cout,) -> pre-transposed/padded bf16 weight, f32 bias."""
    cout, cin, k, _ = w.shape
    # column order must match im2col: (ki, kj, c)
    w_t = jnp.transpose(w, (2, 3, 1, 0)).reshape(k * k * cin, cout)
    _, kp = _k_tiling(k * k * cin)
    _, np_ = _n_tiling(cout)
    w_t = _pad2d(w_t, kp, np_).astype(jnp.bfloat16)
    b_p = _pad2d(b.reshape(1, cout).astype(jnp.float32), 1, np_)
    return w_t, b_p


class DQNPallas:
    def __init__(self, input_channels, num_actions, input_hw,
                 exploration_type="e-greedy", key=jax.random.PRNGKey(0)):
        self.exploration_type = exploration_type
        self.training = True
        self.num_actions = num_actions
        ks = jax.random.split(key, 16)

        conv_cfg = [  # (Cin, Cout, K, stride)
            (input_channels, 32, 8, 4),
            (32, 64, 4, 2),
            (64, 64, 3, 1),
            (64, 128, 3, 1),
        ]
        self.convs = []
        h, w = input_hw
        ki = 0
        for (cin, cout, k, s) in conv_cfg:
            bound = 1.0 / math.sqrt(cin * k * k)
            wgt = _uniform(ks[ki], (cout, cin, k, k), bound)
            bia = _uniform(ks[ki + 1], (cout,), bound)
            ki += 2
            w_t_pad, b_pad = _prep_conv_weight(wgt, bia)
            self.convs.append((w_t_pad, b_pad, cout, k, s))
            h = (h - k) // s + 1
            w = (w - k) // s + 1
        self.conv_out_hw = (h, w)
        self.flat_dim = 128 * h * w

        self.fc1 = self._make_fc(ks[8], ks[9], ks[10], ks[11],
                                 self.flat_dim, 512)
        self.fc2 = self._make_fc(ks[12], ks[13], ks[14], ks[15],
                                 512, num_actions)

    # ---------------- FC layers (plain or NoisyLinear) --------------------
    def _make_fc(self, key_w, key_b, key_ew, key_eb, fan_in, fan_out):
        bound = 1.0 / math.sqrt(fan_in)
        _, kp = _k_tiling(fan_in)
        _, np_ = _n_tiling(fan_out)
        layer = {
            "n_out": fan_out, "kp": kp, "np": np_,
            "w_mu": _uniform(key_w, (fan_out, fan_in), bound),
            "b_mu": _uniform(key_b, (fan_out,), bound),
        }
        if self.exploration_type == "noisynet":
            layer["w_sigma"] = jnp.full((fan_out, fan_in), 0.017, jnp.float32)
            layer["b_sigma"] = jnp.full((fan_out,), 0.017, jnp.float32)
            layer["w_eps"] = jax.random.normal(key_ew, (fan_out, fan_in), jnp.float32)
            layer["b_eps"] = jax.random.normal(key_eb, (fan_out,), jnp.float32)
        self._bake_fc(layer)
        return layer

    def _bake_fc(self, layer):
        """Pre-transpose / pad / bf16-cast weights ONCE (per epsilon sample for
        noisynet) so the forward pass never re-forms or re-casts them in XLA."""
        kp, np_ = layer["kp"], layer["np"]
        layer["w_eval_t"] = _pad2d(layer["w_mu"].T, kp, np_).astype(jnp.bfloat16)
        layer["b_eval"] = _pad2d(layer["b_mu"].reshape(1, -1).astype(jnp.float32),
                                 1, np_)
        if self.exploration_type == "noisynet":
            w = layer["w_mu"] + layer["w_sigma"] * layer["w_eps"]
            b = layer["b_mu"] + layer["b_sigma"] * layer["b_eps"]
            layer["w_train_t"] = _pad2d(w.T, kp, np_).astype(jnp.bfloat16)
            layer["b_train"] = _pad2d(b.reshape(1, -1).astype(jnp.float32), 1, np_)
        else:
            layer["w_train_t"] = layer["w_eval_t"]
            layer["b_train"] = layer["b_eval"]

    def reset_noise(self, key):
        if self.exploration_type != "noisynet":
            return
        k1, k2, k3, k4 = jax.random.split(key, 4)
        for layer, kw, kb in ((self.fc1, k1, k2), (self.fc2, k3, k4)):
            layer["w_eps"] = jax.random.normal(kw, layer["w_mu"].shape, jnp.float32)
            layer["b_eps"] = jax.random.normal(kb, layer["b_mu"].shape, jnp.float32)
            self._bake_fc(layer)

    def _fc_weight(self, layer):
        if self.exploration_type == "noisynet" and self.training:
            return layer["w_train_t"], layer["b_train"]
        return layer["w_eval_t"], layer["b_eval"]

    # ------------------------------ forward -------------------------------
    def forward(self, x):
        # x: (N, C, H, W) float32 (PyTorch layout) -> NHWC bf16 once
        n = x.shape[0]
        x = jnp.transpose(x, (0, 2, 3, 1)).astype(jnp.bfloat16)
        for (w_t_pad, b_pad, cout, k, s) in self.convs:
            x = conv2d_relu_nhwc(x, w_t_pad, b_pad, cout, k, s)
        # flatten in PyTorch NCHW .view(N, -1) order (single small transpose)
        x = jnp.transpose(x, (0, 3, 1, 2)).reshape(n, -1)

        w1_t, b1 = self._fc_weight(self.fc1)
        w2_t, b2 = self._fc_weight(self.fc2)
        # fc1 (+ReLU) and fc2 fused into one kernel; W2/b2 stay VMEM-resident.
        return pallas_fc_head(x, w1_t, b1, w2_t, b2, n_out=self.num_actions)


if __name__ == "__main__":
    # Small shapes consistent with the module: NCHW image input. 52x52 spatial
    # yields a valid (1x1) conv4 output with this conv stack (the original
    # module used 210x160 Atari frames; fc1 fan-in is recomputed accordingly).
    key = jax.random.PRNGKey(0)
    k_in, k_params = jax.random.split(key)

    batch, channels, spatial = 2, 4, 52
    num_actions = 6
    x = jax.random.uniform(k_in, (batch, channels, spatial, spatial), jnp.float32)

    model = DQNPallas(input_channels=channels, num_actions=num_actions,
                      input_hw=(spatial, spatial),
                      exploration_type="e-greedy", key=k_params)

    q_values = model.forward(x)
    q_values = jax.block_until_ready(q_values)
    assert q_values.shape == (batch, num_actions)
    assert q_values.dtype == jnp.float32
    print("KERNEL_OK")
</pallas_src>

<mosaic_0001>
module attributes {stable_mosaic.version = 11 : i64} {
  func.func @_matmul_bias_act_kernel(%arg0: i32, %arg1: i32, %arg2: i32, %arg3: memref<144x256xbf16, #tpu.memory_space<vmem>>, %arg4: memref<256x128xbf16, #tpu.memory_space<vmem>>, %arg5: memref<1x128xf32, #tpu.memory_space<vmem>>, %arg6: memref<144x128xbf16, #tpu.memory_space<vmem>>, %arg7: memref<144x128xf32, #tpu.memory_space<vmem>>) attributes {dimension_semantics = [#tpu.dimension_semantics<parallel>, #tpu.dimension_semantics<parallel>, #tpu.dimension_semantics<arbitrary>], iteration_bounds = array<i64: 2, 1, 1>, scalar_prefetch = 0 : i64, scratch_operands = 1 : i64, tpu.core_type = #tpu.core_type<tc>, window_params = [{transform_indices = @transform_0, window_bounds = array<i64: 144, 256>}, {transform_indices = @transform_1, window_bounds = array<i64: 256, 128>}, {transform_indices = @transform_2, window_bounds = array<i64: 1, 128>}, {transform_indices = @transform_3, window_bounds = array<i64: 144, 128>}]} {
    %c0_i32 = arith.constant 0 : i32
    %0 = arith.cmpi eq, %arg2, %c0_i32 : i32
    %1 = arith.extui %0 : i1 to i32
    %c0_i32_0 = arith.constant 0 : i32
    %2 = arith.cmpi ne, %1, %c0_i32_0 : i32
    scf.if %2 {
      %cst_10 = arith.constant 0.000000e+00 : f32
      %12 = vector.broadcast %cst_10 : f32 to vector<144x128xf32>
      %c0_11 = arith.constant 0 : index
      %c0_12 = arith.constant 0 : index
      %13 = vector.load %arg7[%c0_11, %c0_12] : memref<144x128xf32, #tpu.memory_space<vmem>>, vector<144x128xf32>
      tpu.vector_store %arg7[%c0_11, %c0_12], %12 {strides = array<i32>} : memref<144x128xf32, #tpu.memory_space<vmem>>, vector<144x128xf32>,
    } else {
    }
    %c0 = arith.constant 0 : index
    %c0_1 = arith.constant 0 : index
    %3 = vector.load %arg7[%c0, %c0_1] : memref<144x128xf32, #tpu.memory_space<vmem>>, vector<144x128xf32>
    %c0_2 = arith.constant 0 : index
    %c0_3 = arith.constant 0 : index
    %4 = vector.load %arg3[%c0_2, %c0_3] : memref<144x256xbf16, #tpu.memory_space<vmem>>, vector<144x256xbf16>
    %c0_4 = arith.constant 0 : index
    %c0_5 = arith.constant 0 : index
    %5 = vector.load %arg4[%c0_4, %c0_5] : memref<256x128xbf16, #tpu.memory_space<vmem>>, vector<256x128xbf16>
    %cst = arith.constant dense<0.000000e+00> : vector<144x128xf32>
    %6 = tpu.matmul %4, %5, %cst {dimension_numbers = #tpu.dot_dimension_numbers<[1], [0], [0], [1], [0, 0, 1, 1], [], []>} : vector<144x256xbf16>, vector<256x128xbf16>, vector<144x128xf32> -> vector<144x128xf32>
    %7 = arith.addf %3, %6 : vector<144x128xf32>
    %c0_6 = arith.constant 0 : index
    %c0_7 = arith.constant 0 : index
    %8 = vector.load %arg7[%c0_6, %c0_7] : memref<144x128xf32, #tpu.memory_space<vmem>>, vector<144x128xf32>
    tpu.vector_store %arg7[%c0_6, %c0_7], %7 {strides = array<i32>} : memref<144x128xf32, #tpu.memory_space<vmem>>, vector<144x128xf32>,
    %c0_i32_8 = arith.constant 0 : i32
    %9 = arith.cmpi eq, %arg2, %c0_i32_8 : i32
    %10 = arith.extui %9 : i1 to i32
    %c0_i32_9 = arith.constant 0 : i32
    %11 = arith.cmpi ne, %10, %c0_i32_9 : i32
    scf.if %11 {
      %c0_10 = arith.constant 0 : index
      %c0_11 = arith.constant 0 : index
      %12 = vector.load %arg7[%c0_10, %c0_11] : memref<144x128xf32, #tpu.memory_space<vmem>>, vector<144x128xf32>
      %c0_12 = arith.constant 0 : index
      %c0_13 = arith.constant 0 : index
      %13 = vector.load %arg5[%c0_12, %c0_13] : memref<1x128xf32, #tpu.memory_space<vmem>>, vector<1x128xf32>
      %14 = vector.broadcast %13 : vector<1x128xf32> to vector<144x128xf32>
      %15 = arith.addf %12, %14 : vector<144x128xf32>
      %cst_14 = arith.constant 0.000000e+00 : f32
      %16 = vector.broadcast %cst_14 : f32 to vector<144x128xf32>
      %17 = arith.maximumf %15, %16 : vector<144x128xf32>
      %18 = arith.truncf %17 : vector<144x128xf32> to vector<144x128xbf16>
      %c0_15 = arith.constant 0 : index
      %c0_16 = arith.constant 0 : index
      %19 = vector.load %arg6[%c0_15, %c0_16] : memref<144x128xbf16, #tpu.memory_space<vmem>>, vector<144x128xbf16>
      tpu.vector_store %arg6[%c0_15, %c0_16], %18 {strides = array<i32>} : memref<144x128xbf16, #tpu.memory_space<vmem>>, vector<144x128xbf16>,
    } else {
    }
    return
  }
  func.func @transform_0(%arg0: i32, %arg1: i32, %arg2: i32) -> (i32, i32) {
    %c0_i32 = arith.constant 0 : i32
    return %arg0, %arg2 : i32, i32
  }
  func.func @transform_1(%arg0: i32, %arg1: i32, %arg2: i32) -> (i32, i32) {
    %c0_i32 = arith.constant 0 : i32
    return %arg2, %arg1 : i32, i32
  }
  func.func @transform_2(%arg0: i32, %arg1: i32, %arg2: i32) -> (i32, i32) {
    %c0_i32 = arith.constant 0 : i32
    %c0_i32_0 = arith.constant 0 : i32
    return %c0_i32, %arg1 : i32, i32
  }
  func.func @transform_3(%arg0: i32, %arg1: i32, %arg2: i32) -> (i32, i32) {
    %c0_i32 = arith.constant 0 : i32
    return %arg0, %arg1 : i32, i32
  }
}

</mosaic_0001>

<bundles_post_ra>
// kernel: tpu_custom_call.1
= control target key start
LH: loop header
LB: loop body
LE: loop exit
PB: predicated region body
PF: predicated region fallthrough
CT: control target
= control target key end

     0   :  { %8 = vsyncpa [#allocation4], 0  ;;  %s1757_s0 = inlined_call_operand.hbm [shape: bf16[288,256], index: 0, kind: input, shape index: {}]   ;;  %s1758_s1 = inlined_call_operand.hbm [shape: bf16[256,128], index: 1, kind: input, shape index: {}]   ;;  %s1759_s2 = inlined_call_operand.vmem [shape: f32[1,128], index: 2, kind: input, shape index: {}]   ;;  %s1760_s3 = inlined_call_operand.hbm [shape: bf16[288,128], index: 3, kind: output, shape index: {}]  }
   0x1   :  { %10 = vsyncpa [#allocation4 + $0x1], 0 }
   0x2   :  { %11 = vsyncpa [#allocation7], 0 }
   0x3   :  { %12 = vsyncpa [#allocation5], 0 }
   0x4   :  { %14 = vsyncpa [#allocation5 + $0x1], 0  ;;  %s1488_s12 = smov 0   ;;  %s1490_s13 = smov 0  }
   0x5   :  { %s1492_s14 = smov 0   ;;  %s1494_s15 = smov 0  }
   0x6   :  { %s1496_s16 = smov 0   ;;  %s1498_s17 = smov 0  }
   0x7 LB: > { %s961_s18 = sadd.s32 4294967295, %s1457_s17   ;;  %s962_s19 = sadd.s32 4294967294, %s1457_s17   ;;  %s1457_s17 = sphi %s1498_s17, %s20_s17   ;;  %s1453_s16 = sphi %s1496_s16, %s1783_s16   ;;  %s1449_s15 = sphi %s1494_s15, %s1782_s15   ;;  %s1445_s14 = sphi %s1492_s14, %s1781_s14   ;;  %s1441_s13 = sphi %s1490_s13, %s1780_s13   ;;  %s1437_s12 = sphi %s1488_s12, %s1779_s12  }
   0x8   : > { %p61_p0 = scmp.ne.s32.totalorder %s1441_s13, %s1437_s12  ;;  %p1522_p1 = scmp.eq.s32.totalorder %s961_s18, 0 }
   0x9   : > { %p1526_p2 = scmp.eq.s32.totalorder %s961_s18, 1  ;;  %p147_p3 = scmp.eq.s32.totalorder %s962_s19, 1 }
   0xa   : > { %s1765_s20 = scalar_select %p1522_p1, 1, 0 }
   0xb   : > { %s1766_s21 = scalar_select %p1526_p2, 1, 0 }
   0xc   : > { %p1532_p4 = por %p1522_p1, %p61_p0  ;;  %p963_p5 = scmp.ge.s32.totalorder %s1457_s17, 1 }
   0xd   : > { %p1537_p6 = por %p147_p3, %p61_p0  ;;  %p154_p7 = scmp.lt.s32.totalorder %s1457_s17, 3 }
   0xe   : > { %s1767_s22 = scalar_select %p1532_p4, 1, 0 }
   0xf   : > { %s1768_s23 = scalar_select %p1537_p6, 1, 0 }
  0x10   : > { %p1542_p8 = pnand %p963_p5, %p154_p7  ;;  %s1459_s25 = smov [#allocation6]  }
  0x11   : > { %s170_s26 = sshll.u32 %s1459_s25, 4  ;;  %s39_s28 = sadd.s32 1, %s1453_s16  ;;  %s171_s26 = int_to_ptr.vmem [resolvable:$true] %s170_s26 }
  0x12   : > { %s1769_s24 = scalar_select %p1542_p8, 1, 0 }
  0x13   : > { %p1199_p9 = pneg %p1542_p8  ;;  %s1313_s4 = scalar_lea.hbm %s1758_s1, 2048 }
  0x14   : > { %p1314_p12 = scmp.ne.s32.totalorder %s1758_s1, %s1313_s4  ;;  %p1320_p5 = scmp.lt.u32.totalorder %s1313_s4, %s1758_s1 }
  0x15   : > { %p1551_p11 = pnand %p1199_p9, %p1522_p1 }
  0x17   : > { %p1315_p13 = pneg %p1551_p11 }
  0x19   : > { %p1316_p0 = pnand %p1315_p13, %p1314_p12 }
  0x1b   : > { %p1317_p3 = pneg %p1316_p0 }
  0x1d   : > { %p1322_p7 = pnand %p1320_p5, %p1317_p3 }
  0x1f   : > { %1325 = shalt.err (!%p1322_p7)
}
  0x20   : > { %s1326_s9 = scalar_lea.vmem %s171_s26, 2048  ;;  %p1334_p1 = scmp.lt.s32.totalorder %s171_s26, %s171_s26 }
  0x21   : > { %p1327_p9 = scmp.ne.s32.totalorder %s171_s26, %s1326_s9  ;;  %p1335_p4 = scmp.lt.s32.totalorder %s1326_s9, %s1326_s9 }
  0x23   : > { %p1329_p10 = pnand %p1327_p9, %p1315_p13  ;;  %p1336_p8 = por %p1335_p4, %p1334_p1 }
  0x25   : > { %p1330_p6 = pneg %p1329_p10 }
  0x27   : > { %p1337_p2 = pnand %p1336_p8, %p1330_p6 }
  0x29   : > { %1340 = shalt.err (!%p1337_p2)
}
  0x2a   : > { %s1460_s10 = smov 64   ;;  %s1461_s11 = smov 4  }
  0x2b   : > { %1202 = dma.hbm_to_vmem [thread:$0]  (!%p1551_p11), %s1758_s1, 2048, %s171_s26, [#allocation7], %s1460_s10, %s1460_s10, %s1461_s11  }
  0x2c   : > { %p41_p1 = scmp.ge.s32.totalorder %s39_s28, 2  ;;  %s48_s25 = sadd.s32 1, %s1445_s14 }
  0x2d   : > { %p55_p2 = scmp.ne.s32.totalorder %s1445_s14, %s1441_s13  ;;  %p56_p4 = scmp.eq.s32.totalorder %s1457_s17, 0 }
  0x2e   : > { %s1785_s28 = smov (%p41_p1, %s39_s28), 0  ;;  %p1771_p8 = scmp.ne.s32.totalorder %s1766_s21, 0 }
  0x2f   : > { %p57_p6 = por %p56_p4, %p55_p2  ;;  %s43_s30 = ssub.s32 %s1453_s16, %s1785_s28 }
  0x30   : > { %p1580_p10 = por %p1771_p8, %p55_p2  ;;  %p1212_p12 = scmp.lt.s32.totalorder %s1457_s17, 2 }
  0x31   : > { %p46_p13 = scmp.eq.s32.totalorder %s43_s30, 0  ;;  %s190_s27 = sand.u32 1, %s1445_s14  }
  0x32   : > { %s1188_s4 = smul.u32 144, %s190_s27  ;;  %p1592_p11 = pnand %p1212_p12, %p57_p6 }
  0x33   : > { %s1589_s5 = scalar_select %p46_p13, %s1445_s14, %s48_s25  }
  0x34   : > { %s1093_s26 = smul.u32 2304, %s1453_s16  ;;  %s194_s6 = scalar_lea.vmem [#allocation3], %s1188_s4 }
  0x35   : > { %s204_s7 = sshll.u32 %s194_s6, 4  ;;  %s1603_s11 = scalar_lea.sflag [#allocation4], %s190_s27  ;;  %s1601_s7 = int_to_ptr.vmem [resolvable:$true] %s204_s7 }
  0x36   : > { %s1599_s10 = scalar_lea.hbm %s1757_s0, %s1093_s26  ;;  %p1343_p3 = pneg %p1592_p11 }
  0x37   : > { %s1341_s18 = scalar_lea.hbm %s1599_s10, 2304  ;;  %s1346_s30 = scalar_lea.hbm %s1757_s0, 4608 }
  0x38   : > { %p1342_p0 = scmp.ne.s32.totalorder %s1599_s10, %s1341_s18  ;;  %p1347_p9 = scmp.lt.u32.totalorder %s1599_s10, %s1757_s0 }
  0x39   : > { %p1348_p1 = scmp.lt.u32.totalorder %s1346_s30, %s1341_s18  ;;  %p1350_p4 = scmp.lt.u32.totalorder %s1341_s18, %s1599_s10 }
  0x3a   : > { %p1344_p5 = pnand %p1343_p3, %p1342_p0 }
  0x3b   : > { %p1349_p2 = por %p1348_p1, %p1347_p9 }
  0x3c   : > { %p1345_p7 = pneg %p1344_p5 }
  0x3d   : > { %p1351_p6 = por %p1350_p4, %p1349_p2 }
  0x3f   : > { %p1352_p8 = pnand %p1351_p6, %p1345_p7 }
  0x41   : > { %1355 = shalt.err (!%p1352_p8)
}
  0x42   : > { %s1356_s27 = scalar_lea.vmem %s1601_s7, 2304  ;;  %s1462_s6 = smov [#allocation3]  }
  0x43   : > { %p1357_p12 = scmp.ne.s32.totalorder %s1601_s7, %s1356_s27  ;;  %s1361_s9 = sshll.u32 %s1462_s6, 4  ;;  %s1362_s9 = int_to_ptr.vmem [resolvable:$false] %s1361_s9 }
  0x44   : > { %s1363_s21 = scalar_lea.vmem %s1362_s9, 4608  ;;  %p1364_p5 = scmp.lt.s32.totalorder %s1601_s7, %s1362_s9 }
  0x45   : > { %p1359_p13 = pnand %p1357_p12, %p1343_p3  ;;  %p1365_p9 = scmp.lt.s32.totalorder %s1363_s21, %s1356_s27 }
  0x47   : > { %p1360_p0 = pneg %p1359_p13  ;;  %p1366_p1 = por %p1365_p9, %p1364_p5 }
  0x49   : > { %p1367_p2 = pnand %p1366_p1, %p1360_p0 }
  0x4b   : > { %1370 = shalt.err (!%p1367_p2)
}
  0x4c   : > { %s1463_s18 = smov 128   ;;  %s1464_s19 = smov 8  }
  0x4d   : > { %1206 = dma.hbm_to_vmem [thread:$0]  (!%p1592_p11), %s1599_s10, 2304, %s1601_s7, %s1603_s11, %s1463_s18, %s1463_s18, %s1464_s19  }
  0x4e   : > { %p1774_p3 = scmp.ne.s32.totalorder %s1769_s24, 0 }
  0x4f   : > { %s1634_s25 = sand.u32 (!%p1774_p3), 1, %s1441_s13   ;;  %p1775_p7 = scmp.ne.s32.totalorder (!%p1774_p3), %s1767_s22, 0 }
  0x50   : > { %216 = sbr.rel (%p1774_p3) target bundleno = 394 (0x18a), region = 32  ;;  %s219_s4 = scalar_lea.sflag (!%p1774_p3), [#allocation4], %s1634_s25 }
  0x51   : > { %s1189_s30 = smul.u32 (!%p1774_p3), 144, %s1634_s25 }
  0x53   : > { %s1638_s26 = scalar_lea.vmem (!%p1774_p3), [#allocation3], %s1189_s30 }
  0x57   : > { %1424 = dma.done.wait (%p1775_p7), %s219_s4, 2304  }
  0x58   : > { %1426 = vsyncadd (%p1775_p7), %s219_s4, 4294964992  ;;  %p1776_p11 = scmp.ne.s32.totalorder %s1765_s20, 0 }
  0x5a   : > { %1428 = dma.done.wait (%p1776_p11), [#allocation7], 2048  }
  0x5b   : > { %1430 = vsyncadd (%p1776_p11), [#allocation7], 4294965248  ;;  %v1270_v0 = vld [vmem:[#allocation6 + $0x40] sm:$0xff]   ;;  %v1272_v2 = vld [vmem:[#allocation6 + $0x48] sm:$0xff]   ;;  %s1190_s24 = smul.u32 72, %s1634_s25  ;;  %s832_s9 = scalar_lea.sflag [#allocation5], %s1634_s25 }
  0x5c   : > { %v1271_v1 = vld [vmem:[#allocation6] sm:$0xff]   ;;  %1102 = vmatprep.subr.bf16.mxu0 %v1270_v0  ;;  %1172 = vmatprep.subr.bf16.mxu1 %v1270_v0  ;;  %v1273_v3 = vld [vmem:[#allocation6 + $0x8] sm:$0xff]   ;;  %v1274_v4 = vld [vmem:[#allocation6 + $0x50] sm:$0xff]   ;;  %s1047_s8 = smul.u32 1152, %s1449_s15  ;;  %s1465_s15 = smov [#allocation8]  }
  0x5d   : > { %1103 = vmatpush3.bf16.msra.mxu0 %v1271_v1  ;;  %1180 = vmatpush3.bf16.msra.mxu1 %v1271_v1  ;;  %v1275_v5 = vld [vmem:[#allocation6 + $0x10] sm:$0xff]   ;;  %v1276_v6 = vld [vmem:[#allocation6 + $0x58] sm:$0xff]   ;;  %v1278_v8 = vld [vmem:[#allocation6 + $0x60] sm:$0xff]   ;;  %s1676_s7 = scalar_lea.vmem [#allocation8], %s1190_s24  ;;  %s1375_s18 = sshll.u32 %s1465_s15, 4  ;;  %s1376_s18 = int_to_ptr.vmem [resolvable:$false] %s1375_s18 }
  0x5e   : > { %1104 = vmatprep.subr.bf16.mxu0 %v1272_v2  ;;  %1173 = vmatprep.subr.bf16.mxu1 %v1272_v2  ;;  %v1277_v7 = vld [vmem:[#allocation6 + $0x18] sm:$0xff]   ;;  %v1279_v9 = vld [vmem:[#allocation6 + $0x20] sm:$0xff]   ;;  %v1280_v10 = vld [vmem:[#allocation6 + $0x68] sm:$0xff]   ;;  %s846_s10 = sshll.u32 %s1676_s7, 4  ;;  %s1705_s6 = scalar_lea.hbm %s1760_s3, %s1047_s8  ;;  %s1707_s10 = int_to_ptr.vmem [resolvable:$true] %s846_s10 }
  0x5f   : > { %v1288_v11 = vld [vmem:[%s1638_s26 + $0x4] ss:$8 sps:$4 sm:$0xff]   ;;  %v1291_v12 = vld [vmem:[%s1638_s26 + $0x54] ss:$8 sps:$4 sm:$0xff]   ;;  %v1286_v18 = vld [vmem:[%s1638_s26] ss:$8 sps:$4 sm:$0xff]   ;;  %p1378_p12 = scmp.lt.s32.totalorder %s1707_s10, %s1376_s18 }
  0x60   : > { %v1281_v13 = vld [vmem:[#allocation6 + $0x28] sm:$0xff]   ;;  %v1282_v14 = vld [vmem:[#allocation6 + $0x70] sm:$0xff]   ;;  %568 = vmatprep.mubr.bf16.mxu0 %v1288_v11  ;;  %608 = vmatprep.mubr.bf16.mxu1 %v1291_v12  ;;  %v1284_v16 = vld [vmem:[#allocation6 + $0x78] sm:$0xff]   ;;  %s1371_s21 = scalar_lea.vmem %s1707_s10, 1152  ;;  %s1377_s19 = scalar_lea.vmem %s1376_s18, 2304 }
  0x61   : > { %1105 = vmatpush3.bf16.msra.mxu0 %v1273_v3  ;;  %1181 = vmatpush3.bf16.msra.mxu1 %v1273_v3  ;;  %v1283_v15 = vld [vmem:[#allocation6 + $0x30] sm:$0xff]   ;;  %v1285_v17 = vld [vmem:[#allocation6 + $0x38] sm:$0xff]   ;;  %v1669_v37 = vld [vmem:[%s1759_s2] ss:$0 sm:$0xff]  ;;  %p1372_p4 = scmp.ne.s32.totalorder %s1707_s10, %s1371_s21  ;;  %p1379_p13 = scmp.lt.s32.totalorder %s1377_s19, %s1371_s21 }
  0x62   : > { %1106 = vmatprep.subr.bf16.mxu0 %v1274_v4  ;;  %1174 = vmatprep.subr.bf16.mxu1 %v1274_v4  ;;  %v1289_v19 = vld [vmem:[%s1638_s26 + $0x50] ss:$8 sps:$4 sm:$0xff]   ;;  %v1292_v20 = vld [vmem:[%s1638_s26 + $0x14] ss:$8 sps:$4 sm:$0xff]   ;;  %v1295_v21 = vld [vmem:[%s1638_s26 + $0x64] ss:$8 sps:$4 sm:$0xff]  }
  0x63   : > { %v1294_v22 = vld [vmem:[%s1638_s26 + $0x10] ss:$8 sps:$4 sm:$0xff]   ;;  %v1297_v23 = vld [vmem:[%s1638_s26 + $0x60] ss:$8 sps:$4 sm:$0xff]   ;;  %v1298_v24 = vld [vmem:[%s1638_s26 + $0x24] ss:$8 sps:$4 sm:$0xff]   ;;  %p1373_p6 = pnand %p1372_p4, %p1580_p10  ;;  %p1380_p0 = por %p1379_p13, %p1378_p12 }
  0x64   : > { %v1301_v25 = vld [vmem:[%s1638_s26 + $0x74] ss:$8 sps:$4 sm:$0xff]   ;;  %v1300_v26 = vld [vmem:[%s1638_s26 + $0x20] ss:$8 sps:$4 sm:$0xff]   ;;  %v1303_v27 = vld [vmem:[%s1638_s26 + $0x70] ss:$8 sps:$4 sm:$0xff]  }
  0x65   : > { %1107 = vmatpush3.bf16.msra.mxu0 %v1275_v5  ;;  %1182 = vmatpush3.bf16.msra.mxu1 %v1275_v5  ;;  %v1304_v28 = vld [vmem:[%s1638_s26 + $0x34] ss:$8 sps:$4 sm:$0xff]   ;;  %v1307_v29 = vld [vmem:[%s1638_s26 + $0x84] ss:$8 sps:$4 sm:$0xff]   ;;  %v1306_v30 = vld [vmem:[%s1638_s26 + $0x30] ss:$8 sps:$4 sm:$0xff]   ;;  %p1374_p8 = pneg %p1373_p6 }
  0x66   : > { %1108 = vmatprep.subr.bf16.mxu0 %v1276_v6  ;;  %1175 = vmatprep.subr.bf16.mxu1 %v1276_v6  ;;  %v1309_v31 = vld [vmem:[%s1638_s26 + $0x80] ss:$8 sps:$4 sm:$0xff]   ;;  %v1310_v32 = vld [vmem:[%s1638_s26 + $0x44] ss:$8 sps:$4 sm:$0xff]  }
  0x67   : > { %v1312_v33 = vld [vmem:[%s1638_s26 + $0x40] ss:$8 sps:$4 sm:$0xff]   ;;  %p1381_p5 = pnand %p1380_p0, %p1374_p8 }
  0x69   : > { %1109 = vmatpush3.bf16.msra.mxu0 %v1277_v7  ;;  %1183 = vmatpush3.bf16.msra.mxu1 %v1277_v7 }
  0x6a   : > { %1110 = vmatprep.subr.bf16.mxu0 %v1278_v8  ;;  %1176 = vmatprep.subr.bf16.mxu1 %v1278_v8 }
  0x6d   : > { %1111 = vmatpush3.bf16.msra.mxu0 %v1279_v9  ;;  %1184 = vmatpush3.bf16.msra.mxu1 %v1279_v9 }
  0x6e   : > { %1112 = vmatprep.subr.bf16.mxu0 %v1280_v10  ;;  %1177 = vmatprep.subr.bf16.mxu1 %v1280_v10 }
  0x71   : > { %1113 = vmatpush3.bf16.msra.mxu0 %v1281_v13  ;;  %1185 = vmatpush3.bf16.msra.mxu1 %v1281_v13 }
  0x72   : > { %1114 = vmatprep.subr.bf16.mxu0 %v1282_v14  ;;  %1178 = vmatprep.subr.bf16.mxu1 %v1282_v14 }
  0x75   : > { %1115 = vmatpush3.bf16.msra.mxu0 %v1283_v15  ;;  %1186 = vmatpush3.bf16.msra.mxu1 %v1283_v15 }
  0x76   : > { %1116 = vmatprep.subr.bf16.mxu0 %v1284_v16  ;;  %1179 = vmatprep.subr.bf16.mxu1 %v1284_v16 }
  0x79   : > { %1117 = vmatpush3.bf16.msra.mxu0 %v1285_v17  ;;  %1187 = vmatpush3.bf16.msra.mxu1 %v1285_v17 }
  0x7c   : > { %569 = vmatmul.mubr.bf16.vlgmr.msra.gmra.mrb[0].mxu0 %v1286_v18  ;;  %609 = vmatmul.mubr.bf16.vlgmr.msra.gmra.mrb[0].mxu1 %v1289_v19 }
  0x7d   : > { %576 = vmatprep.mubr.bf16.mxu0 %v1292_v20  ;;  %616 = vmatprep.mubr.bf16.mxu1 %v1295_v21 }
  0x84   : > { %577 = vmatmul.mubr.bf16.gmra.mrb[4].mxu0 %v1294_v22  ;;  %617 = vmatmul.mubr.bf16.gmra.mrb[4].mxu1 %v1297_v23 }
  0x85   : > { %584 = vmatprep.mubr.bf16.mxu0 %v1298_v24  ;;  %624 = vmatprep.mubr.bf16.mxu1 %v1301_v25 }
  0x8c   : > { %585 = vmatmul.mubr.bf16.gmra.mrb[8].mxu0 %v1300_v26  ;;  %625 = vmatmul.mubr.bf16.gmra.mrb[8].mxu1 %v1303_v27 }
  0x8d   : > { %592 = vmatprep.mubr.bf16.mxu0 %v1304_v28  ;;  %632 = vmatprep.mubr.bf16.mxu1 %v1307_v29 }
  0x94   : > { %593 = vmatmul.mubr.bf16.gmra.mrb[12].mxu0 %v1306_v30  ;;  %633 = vmatmul.mubr.bf16.gmra.mrb[12].mxu1 %v1309_v31 }
  0x95   : > { %600 = vmatprep.mubr.bf16.mxu0 %v1310_v32 }
  0x9c   : > { %601 = vmatmul.mubr.bf16.gmra.mrb[16].mxu0 %v1312_v33 }
 0x14f   : > { %v1118_v34 = vpop.f32.mrb[0].mxu0  ;;  %v1148_v35 = vpop.f32.mrb[0].mxu1 }
 0x150   : > { %v1119_v36 = vpop.f32.mrb[1].mxu0  ;;  %v1149_v38 = vpop.f32.mrb[1].mxu1 }
 0x151   : > { %v1120_v39 = vadd.f32 %v1119_v36, %v1118_v34  ;;  %v1121_v40 = vpop.f32.mrb[2].mxu0  ;;  %v1150_v41 = vadd.f32 %v1149_v38, %v1148_v35  ;;  %v1151_v42 = vpop.f32.mrb[2].mxu1 }
 0x152   : > { %v1122_v43 = vpop.f32.mrb[3].mxu0  ;;  %v1152_v44 = vpop.f32.mrb[3].mxu1 }
 0x153   : > { %v705_v45 = vadd.f32 %v1120_v39, %v1669_v37  ;;  %v1123_v46 = vadd.f32 %v1122_v43, %v1121_v40  ;;  %v715_v47 = vadd.f32 %v1150_v41, %v1669_v37  ;;  %v1153_v48 = vadd.f32 %v1152_v44, %v1151_v42 }
 0x155   : > { %v706_v49 = vadd.f32 %v1123_v46, %v1669_v37  ;;  %v733_v50 = vmax.f32 %v715_v47, 0.0  ;;  %v716_v51 = vadd.f32 %v1153_v48, %v1669_v37  ;;  %v723_v52 = vmax.f32 %v705_v45, 0.0 }
 0x157   : > { %v724_v53 = vmax.f32 %v706_v49, 0.0  ;;  %v1124_v54 = vpop.f32.mrb[4].mxu0  ;;  %v734_v55 = vmax.f32 %v716_v51, 0.0  ;;  %v1154_v56 = vpop.f32.mrb[4].mxu1 }
 0x158   : > { %v1125_v57 = vpop.f32.mrb[5].mxu0  ;;  %v1155_v58 = vpop.f32.mrb[5].mxu1 }
 0x159   : > { %v1051_v59 = vpack.c.bf16 %v724_v53, %v723_v52  ;;  %v1076_v60 = vpack.c.bf16 %v734_v55, %v733_v50  ;;  %v1126_v61 = vadd.f32 %v1125_v57, %v1124_v54  ;;  %v1127_v62 = vpop.f32.mrb[6].mxu0  ;;  %v1156_v63 = vadd.f32 %v1155_v58, %v1154_v56  ;;  %v1157_v0 = vpop.f32.mrb[6].mxu1 }
 0x15a   : > { %v1128_v1 = vpop.f32.mrb[7].mxu0  ;;  %v1158_v2 = vpop.f32.mrb[7].mxu1 }
 0x15b   : > { %1052 = vst [vmem:[%s1676_s7] sm:$0xff] %v1051_v59   ;;  %1098 = vst [vmem:[%s1676_s7 + $0x28] sm:$0xff] %v1076_v60   ;;  %v707_v3 = vadd.f32 %v1126_v61, %v1669_v37  ;;  %v1129_v4 = vadd.f32 %v1128_v1, %v1127_v62  ;;  %v717_v5 = vadd.f32 %v1156_v63, %v1669_v37 }
 0x15c   : > { %v1159_v6 = vadd.f32 %v1158_v2, %v1157_v0 }
 0x15d   : > { %v708_v7 = vadd.f32 %v1129_v4, %v1669_v37  ;;  %v735_v8 = vmax.f32 %v717_v5, 0.0  ;;  %v725_v10 = vmax.f32 %v707_v3, 0.0 }
 0x15e   : > { %v718_v9 = vadd.f32 %v1159_v6, %v1669_v37 }
 0x15f   : > { %v726_v11 = vmax.f32 %v708_v7, 0.0  ;;  %v1130_v12 = vpop.f32.mrb[8].mxu0  ;;  %v1160_v14 = vpop.f32.mrb[8].mxu1 }
 0x160   : > { %v736_v13 = vmax.f32 %v718_v9, 0.0  ;;  %v1131_v15 = vpop.f32.mrb[9].mxu0  ;;  %v1161_v16 = vpop.f32.mrb[9].mxu1 }
 0x161   : > { %v1056_v17 = vpack.c.bf16 %v726_v11, %v725_v10  ;;  %v1132_v19 = vadd.f32 %v1131_v15, %v1130_v12  ;;  %v1133_v20 = vpop.f32.mrb[10].mxu0  ;;  %v1162_v21 = vadd.f32 %v1161_v16, %v1160_v14  ;;  %v1163_v22 = vpop.f32.mrb[10].mxu1 }
 0x162   : > { %v1081_v18 = vpack.c.bf16 %v736_v13, %v735_v8  ;;  %v1134_v23 = vpop.f32.mrb[11].mxu0  ;;  %v1164_v24 = vpop.f32.mrb[11].mxu1 }
 0x163   : > { %1094 = vst [vmem:[%s1676_s7 + $0x8] sm:$0xff] %v1056_v17   ;;  %v709_v25 = vadd.f32 %v1132_v19, %v1669_v37  ;;  %v1135_v26 = vadd.f32 %v1134_v23, %v1133_v20  ;;  %v719_v27 = vadd.f32 %v1162_v21, %v1669_v37  ;;  %v1165_v28 = vadd.f32 %v1164_v24, %v1163_v22 }
 0x164   : > { %1099 = vst [vmem:[%s1676_s7 + $0x30] sm:$0xff] %v1081_v18  }
 0x165   : > { %v710_v29 = vadd.f32 %v1135_v26, %v1669_v37  ;;  %v737_v30 = vmax.f32 %v719_v27, 0.0  ;;  %v720_v31 = vadd.f32 %v1165_v28, %v1669_v37  ;;  %v727_v32 = vmax.f32 %v709_v25, 0.0 }
 0x167   : > { %v728_v33 = vmax.f32 %v710_v29, 0.0  ;;  %v1136_v34 = vpop.f32.mrb[12].mxu0  ;;  %v738_v35 = vmax.f32 %v720_v31, 0.0  ;;  %v1166_v36 = vpop.f32.mrb[12].mxu1 }
 0x168   : > { %v1137_v38 = vpop.f32.mrb[13].mxu0  ;;  %v1167_v39 = vpop.f32.mrb[13].mxu1 }
 0x169   : > { %v1061_v40 = vpack.c.bf16 %v728_v33, %v727_v32  ;;  %v1086_v41 = vpack.c.bf16 %v738_v35, %v737_v30  ;;  %v1138_v42 = vadd.f32 %v1137_v38, %v1136_v34  ;;  %v1139_v43 = vpop.f32.mrb[14].mxu0  ;;  %v1168_v44 = vadd.f32 %v1167_v39, %v1166_v36  ;;  %v1169_v45 = vpop.f32.mrb[14].mxu1 }
 0x16a   : > { %v1140_v46 = vpop.f32.mrb[15].mxu0  ;;  %v1170_v47 = vpop.f32.mrb[15].mxu1 }
 0x16b   : > { %1095 = vst [vmem:[%s1676_s7 + $0x10] sm:$0xff] %v1061_v40   ;;  %1100 = vst [vmem:[%s1676_s7 + $0x38] sm:$0xff] %v1086_v41   ;;  %v711_v48 = vadd.f32 %v1138_v42, %v1669_v37  ;;  %v1141_v49 = vadd.f32 %v1140_v46, %v1139_v43  ;;  %v721_v50 = vadd.f32 %v1168_v44, %v1669_v37 }
 0x16c   : > { %v1171_v51 = vadd.f32 %v1170_v47, %v1169_v45 }
 0x16d   : > { %v712_v52 = vadd.f32 %v1141_v49, %v1669_v37  ;;  %v739_v53 = vmax.f32 %v721_v50, 0.0  ;;  %v729_v55 = vmax.f32 %v711_v48, 0.0 }
 0x16e   : > { %v722_v54 = vadd.f32 %v1171_v51, %v1669_v37 }
 0x16f   : > { %v730_v56 = vmax.f32 %v712_v52, 0.0  ;;  %v1142_v57 = vpop.f32.mrb[16].mxu0 }
 0x170   : > { %v740_v58 = vmax.f32 %v722_v54, 0.0  ;;  %v1143_v59 = vpop.f32.mrb[17].mxu0 }
 0x171   : > { %v1066_v60 = vpack.c.bf16 %v730_v56, %v729_v55  ;;  %v1144_v62 = vadd.f32 %v1143_v59, %v1142_v57  ;;  %v1145_v63 = vpop.f32.mrb[18].mxu0 }
 0x172   : > { %v1091_v61 = vpack.c.bf16 %v740_v58, %v739_v53  ;;  %v1146_v0 = vpop.f32.mrb[19].mxu0 }
 0x173   : > { %1096 = vst [vmem:[%s1676_s7 + $0x18] sm:$0xff] %v1066_v60   ;;  %v713_v1 = vadd.f32 %v1144_v62, %v1669_v37  ;;  %v1147_v2 = vadd.f32 %v1146_v0, %v1145_v63 }
 0x174   : > { %1101 = vst [vmem:[%s1676_s7 + $0x40] sm:$0xff] %v1091_v61  }
 0x175   : > { %v714_v3 = vadd.f32 %v1147_v2, %v1669_v37  ;;  %v731_v4 = vmax.f32 %v713_v1, 0.0 }
 0x177   : > { %v732_v5 = vmax.f32 %v714_v3, 0.0 }
 0x179   : > { %v1071_v6 = vpack.c.bf16 %v732_v5, %v731_v4 }
 0x17b   : > { %1097 = vst [vmem:[%s1676_s7 + $0x20] sm:$0xff] %v1071_v6  }
 0x17c   : > { %1384 = shalt.err (!%p1381_p5)
}
 0x17d   : > { %s1385_s30 = scalar_lea.hbm %s1705_s6, 1152  ;;  %s1389_s20 = scalar_lea.hbm %s1760_s3, 2304 }
 0x17e   : > { %p1386_p9 = scmp.ne.s32.totalorder %s1705_s6, %s1385_s30  ;;  %p1390_p3 = scmp.lt.u32.totalorder %s1705_s6, %s1760_s3 }
 0x17f   : > { %p1391_p7 = scmp.lt.u32.totalorder %s1389_s20, %s1385_s30  ;;  %p1393_p4 = scmp.lt.u32.totalorder %s1385_s30, %s1705_s6 }
 0x180   : > { %p1387_p1 = pnand %p1386_p9, %p1580_p10 }
 0x181   : > { %p1392_p11 = por %p1391_p7, %p1390_p3 }
 0x182   : > { %p1388_p2 = pneg %p1387_p1 }
 0x183   : > { %p1394_p6 = por %p1393_p4, %p1392_p11 }
 0x185   : > { %p1395_p8 = pnand %p1394_p6, %p1388_p2 }
 0x187   : > { %1398 = shalt.err (!%p1395_p8)
}
 0x188   : > { %s1466_s7 = smov 64   ;;  %s1467_s8 = smov 4  }
 0x189   : > { %1197 = dma.vmem_to_hbm [thread:$0]  (%p1580_p10), %s1707_s10, 1152, %s1705_s6, %s832_s9, %s1466_s7, %s1466_s7, %s1467_s8  }
 0x18a PF: > { %s861_s11 = sand.u32 1, %s1437_s12   ;;  %p1777_p12 = scmp.ne.s32.totalorder %s1768_s23, 0 }
 0x18b   : > { %p1778_p13 = scmp.ge.s32.totalorder %s1457_s17, 2  ;;  %s862_s27 = scalar_lea.sflag [#allocation5], %s861_s11 }
 0x18d   : > { %p1208_p0 = pnand %p1778_p13, %p1777_p12 }
 0x18f   : > { %1432 = dma.done.wait (!%p1208_p0), %s862_s27, 1152  }
 0x190   : > { %1434 = vsyncadd (!%p1208_p0), %s862_s27, 4294966144  ;;  %s20_s17 = sadd.s32 1, %s1457_s17   ;;  %s1779_s12 = smov %s1441_s13 }
 0x191   : > { %p17_p5 = scmp.ge.s32.totalorder %s20_s17, 4   ;;  %s1780_s13 = smov %s1445_s14 }
 0x192   : > { %s1781_s14 = smov %s1589_s5  ;;  %s1782_s15 = smov %s1453_s16 }
 0x193   : > { %s1783_s16 = smov %s1785_s28  ;;  %19 = sbr.rel (!%p17_p5) target bundleno = 7 (0x7), region = 93 }
 0x19a   :  { %867 = vsyncpa [#allocation4], 1 }
 0x19b   :  { %869 = vsyncpa [#allocation4 + $0x1], 1 }
 0x19c   :  { %870 = vsyncpa [#allocation7], 1 }
 0x19d   :  { %871 = vsyncpa [#allocation5], 1 }
 0x19e   :  { %873 = vsyncpa [#allocation5 + $0x1], 1 }

</bundles_post_ra>
